<compile_context>
chip_gen: v7x
topology: tpu7x:2x2x1
jax: 0.10.0
libtpu: 0.0.40
codegen_flags: <defaults>
</compile_context>

<pallas_src>
import jax
import jax.numpy as jnp
from jax.experimental import pallas as pl
from jax.experimental.pallas import tpu as pltpu


def _round_up(x, m):
    return ((x + m - 1) // m) * m


def _default_fold():
    """Fold factor: 8 rows -> 256-wide contraction (v6e/v7x MXU); 4 rows -> 128 (v5e)."""
    try:
        kind = jax.devices()[0].device_kind.lower()
    except Exception:
        return 8
    if "v5e" in kind or "v5 lite" in kind or "v5litepod" in kind:
        return 4
    return 8


def pack_feature_attention_params(w1, b1, w2, b2, wa, *, fold, dtype=jnp.float32):
    """One-time weight packing (hoisted out of the per-call path).

    Inputs are the PyTorch weights pre-transposed to [in, out]:
      w1 (S,H), b1 (1,H), w2 (H,T), b2 (1,T), wa (S,T).
    Returns block-diagonally replicated weights for the `fold`-row lane-packed layout.
    Off-diagonal blocks are exactly zero, so per-row semantics are preserved.
    """
    def bd(w):
        return jax.scipy.linalg.block_diag(*([w] * fold)).astype(dtype)

    return dict(
        fold=fold,
        wa_bd=bd(wa),                                   # (fold*S, fold*T)
        w1_bd=bd(w1),                                   # (fold*S, fold*H)
        w2_bd=bd(w2),                                   # (fold*H, fold*T)
        b1_t=jnp.tile(b1, (1, fold)).astype(dtype),     # (1, fold*H)
        b2_t=jnp.tile(b2, (1, fold)).astype(dtype),     # (1, fold*T)
    )


def _feature_attention_kernel(src_ref, tgt_ref, wa_ref, w1_ref, b1_ref, w2_ref, b2_ref,
                              out_ref):
    src = src_ref[...]                                                     # (tb, fold*S)
    # feature_adapter: block-diagonal Wa -> lane-packed per-row src @ Wa   (tb, fold*T)
    adapted = jnp.dot(src, wa_ref[...], preferred_element_type=jnp.float32)
    # attention_net: Linear -> ReLU -> Linear -> Sigmoid (f32 accumulation / epilogue)
    h = jnp.maximum(
        jnp.dot(src, w1_ref[...], preferred_element_type=jnp.float32) + b1_ref[...], 0.0)
    logits = jnp.dot(h.astype(w2_ref.dtype), w2_ref[...],
                     preferred_element_type=jnp.float32) + b2_ref[...]
    attn = jax.nn.sigmoid(logits)                                          # (tb, fold*T)
    out_ref[...] = (tgt_ref[...].astype(jnp.float32) + adapted * attn).astype(out_ref.dtype)


def _choose_block_bf(bf_rows, max_block_bf=2048):
    """Folded rows per grid step.

    Large tiles (up to ~4 MiB of activation traffic / step) amortize the ~0.35 us
    per-step overhead; an even step count >= 2 (when the batch is big enough) lets the
    "parallel" batch axis shard across v7x's two TensorCores.
    """
    bf_rows = _round_up(bf_rows, 8)
    if bf_rows <= max_block_bf:
        if bf_rows >= 512:                       # big enough: split into 2 even steps
            return _round_up(pl.cdiv(bf_rows, 2), 8)
        return bf_rows                           # single step
    nb = pl.cdiv(bf_rows, max_block_bf)
    if nb % 2:                                   # even step count for the 2-TC split
        nb += 1
    return _round_up(pl.cdiv(bf_rows, nb), 8)


def feature_attention(src, tgt, params, *, block_bf=None):
    """src: (B, S), tgt: (B, T); params from pack_feature_attention_params()."""
    B, S = src.shape
    _, T = tgt.shape
    fold = params["fold"]
    wa_bd, w1_bd, w2_bd = params["wa_bd"], params["w1_bd"], params["w2_bd"]
    b1_t, b2_t = params["b1_t"], params["b2_t"]
    dtype = wa_bd.dtype

    FS, FT = fold * S, fold * T
    FH = w1_bd.shape[1]
    assert wa_bd.shape == (FS, FT) and w2_bd.shape == (FH, FT)

    # Folded batch: `fold` original rows share one lane-packed row.
    Bf = pl.cdiv(B, fold)
    if block_bf is None:
        block_bf = _choose_block_bf(Bf)
    block_bf = max(8, _round_up(block_bf, 8))
    num_blocks = pl.cdiv(Bf, block_bf)
    Bfp = num_blocks * block_bf
    Bp = Bfp * fold

    src = src.astype(dtype)
    tgt = tgt.astype(dtype)
    if Bp != B:                                  # tail handling via zero-pad (sliced off)
        pad = Bp - B
        src = jnp.pad(src, ((0, pad), (0, 0)))
        tgt = jnp.pad(tgt, ((0, pad), (0, 0)))
    # Free, row-major contiguous reshapes: fold rows onto the lane axis.
    src_f = src.reshape(Bfp, FS)
    tgt_f = tgt.reshape(Bfp, FT)

    out_f = pl.pallas_call(
        _feature_attention_kernel,
        out_shape=jax.ShapeDtypeStruct((Bfp, FT), tgt.dtype),
        grid_spec=pltpu.PrefetchScalarGridSpec(
            num_scalar_prefetch=0,
            grid=(num_blocks,),
            in_specs=[
                pl.BlockSpec((block_bf, FS), lambda i: (i, 0)),   # folded source rows
                pl.BlockSpec((block_bf, FT), lambda i: (i, 0)),   # folded target rows
                pl.BlockSpec((FS, FT), lambda i: (0, 0)),         # Wa block-diag (grid-invariant)
                pl.BlockSpec((FS, FH), lambda i: (0, 0)),         # W1 block-diag
                pl.BlockSpec((1, FH), lambda i: (0, 0)),          # b1 lane-tiled
                pl.BlockSpec((FH, FT), lambda i: (0, 0)),         # W2 block-diag
                pl.BlockSpec((1, FT), lambda i: (0, 0)),          # b2 lane-tiled
            ],
            out_specs=pl.BlockSpec((block_bf, FT), lambda i: (i, 0)),
        ),
        compiler_params=pltpu.CompilerParams(dimension_semantics=("parallel",)),
    )(src_f, tgt_f, wa_bd, w1_bd, b1_t, w2_bd, b2_t)

    out = out_f.reshape(Bp, T)
    return out[:B] if Bp != B else out


def _ref_forward(src, tgt, w1, b1, w2, b2, wa):
    h = jnp.maximum(src @ w1 + b1, 0.0)
    attn = jax.nn.sigmoid(h @ w2 + b2)
    return tgt + (src @ wa) * attn


if __name__ == "__main__":
    # Module config: source_features=32, target_features=16
    #   hidden = max(min(32, 16) // 4, 1) = 4
    #   feature_adapter = Linear(32 -> 16, bias=False)   (since S != T)
    B, S, T = 16, 32, 16
    H = max(min(S, T) // 4, 1)
    fold = _default_fold()

    key = jax.random.PRNGKey(0)
    ks = jax.random.split(key, 7)

    # Deterministic parameter init (uniform, PyTorch-Linear-like fan_in scaling).
    def init_w(k, fan_in, shape):
        bound = 1.0 / jnp.sqrt(fan_in)
        return jax.random.uniform(k, shape, jnp.float32, -bound, bound)

    w1 = init_w(ks[0], S, (S, H))        # attention_net[0].weight^T
    b1 = init_w(ks[1], S, (1, H))        # attention_net[0].bias
    w2 = init_w(ks[2], H, (H, T))        # attention_net[2].weight^T
    b2 = init_w(ks[3], H, (1, T))        # attention_net[2].bias
    wa = init_w(ks[4], S, (S, T))        # feature_adapter.weight^T

    # One-time parameter packing (hoisted out of the per-call path).
    params_f32 = pack_feature_attention_params(w1, b1, w2, b2, wa, fold=fold,
                                               dtype=jnp.float32)

    # Case 1: tiny batch, single grid step, f32, tight tolerance.
    src = jax.random.normal(ks[5], (B, S), jnp.float32)
    tgt = jax.random.normal(ks[6], (B, T), jnp.float32)
    out = jax.block_until_ready(feature_attention(src, tgt, params_f32))
    ref = _ref_forward(src, tgt, w1, b1, w2, b2, wa)
    assert out.shape == (B, T)
    assert jnp.allclose(out, ref, atol=1e-5, rtol=1e-5), "mismatch vs reference (case 1)"

    # Case 2: batch not divisible by fold or tile -> multi-step grid + padded tail.
    B2 = 300
    src2 = jax.random.normal(jax.random.PRNGKey(1), (B2, S), jnp.float32)
    tgt2 = jax.random.normal(jax.random.PRNGKey(2), (B2, T), jnp.float32)
    out2 = jax.block_until_ready(feature_attention(src2, tgt2, params_f32, block_bf=16))
    ref2 = _ref_forward(src2, tgt2, w1, b1, w2, b2, wa)
    assert out2.shape == (B2, T)
    assert jnp.allclose(out2, ref2, atol=1e-5, rtol=1e-5), "mismatch vs reference (case 2)"

    # Case 3: bf16 activation/weight storage (f32 MXU accumulation), large batch,
    # auto tile (2 even grid steps -> both v7x TensorCores). Looser bf16 tolerance.
    params_bf16 = pack_feature_attention_params(w1, b1, w2, b2, wa, fold=fold,
                                                dtype=jnp.bfloat16)
    B3 = 8192
    src3 = jax.random.normal(jax.random.PRNGKey(3), (B3, S), jnp.float32)
    tgt3 = jax.random.normal(jax.random.PRNGKey(4), (B3, T), jnp.float32)
    out3 = jax.block_until_ready(feature_attention(src3, tgt3, params_bf16))
    c = lambda x: x.astype(jnp.bfloat16).astype(jnp.float32)   # bf16-rounded reference inputs
    ref3 = _ref_forward(c(src3), c(tgt3), c(w1), c(b1), c(w2), c(b2), c(wa))
    assert out3.shape == (B3, T)
    assert jnp.allclose(out3.astype(jnp.float32), ref3, atol=2e-2, rtol=2e-2), \
        "mismatch vs reference (case 3, bf16)"

    print("KERNEL_OK")
</pallas_src>

<mosaic_0001>
module attributes {stable_mosaic.version = 11 : i64} {
  func.func @_feature_attention_kernel(%arg0: i32, %arg1: memref<8x256xf32, #tpu.memory_space<vmem>>, %arg2: memref<8x128xf32, #tpu.memory_space<vmem>>, %arg3: memref<256x128xf32, #tpu.memory_space<vmem>>, %arg4: memref<256x32xf32, #tpu.memory_space<vmem>>, %arg5: memref<1x32xf32, #tpu.memory_space<vmem>>, %arg6: memref<32x128xf32, #tpu.memory_space<vmem>>, %arg7: memref<1x128xf32, #tpu.memory_space<vmem>>, %arg8: memref<8x128xf32, #tpu.memory_space<vmem>>) attributes {dimension_semantics = [#tpu.dimension_semantics<parallel>], iteration_bounds = array<i64: 1>, scalar_prefetch = 0 : i64, scratch_operands = 0 : i64, tpu.core_type = #tpu.core_type<tc>, window_params = [{transform_indices = @transform_0, window_bounds = array<i64: 8, 256>}, {transform_indices = @transform_1, window_bounds = array<i64: 8, 128>}, {pipeline_mode = #tpu.pipeline_mode<synchronous>, transform_indices = @transform_2, window_bounds = array<i64: 256, 128>}, {pipeline_mode = #tpu.pipeline_mode<synchronous>, transform_indices = @transform_3, window_bounds = array<i64: 256, 32>}, {pipeline_mode = #tpu.pipeline_mode<synchronous>, transform_indices = @transform_4, window_bounds = array<i64: 1, 32>}, {pipeline_mode = #tpu.pipeline_mode<synchronous>, transform_indices = @transform_5, window_bounds = array<i64: 32, 128>}, {pipeline_mode = #tpu.pipeline_mode<synchronous>, transform_indices = @transform_6, window_bounds = array<i64: 1, 128>}, {transform_indices = @transform_7, window_bounds = array<i64: 8, 128>}]} {
    %c0 = arith.constant 0 : index
    %c0_0 = arith.constant 0 : index
    %0 = vector.load %arg1[%c0, %c0_0] : memref<8x256xf32, #tpu.memory_space<vmem>>, vector<8x256xf32>
    %c0_1 = arith.constant 0 : index
    %c0_2 = arith.constant 0 : index
    %1 = vector.load %arg3[%c0_1, %c0_2] : memref<256x128xf32, #tpu.memory_space<vmem>>, vector<256x128xf32>
    %cst = arith.constant dense<0.000000e+00> : vector<8x128xf32>
    %2 = tpu.matmul %0, %1, %cst {dimension_numbers = #tpu.dot_dimension_numbers<[1], [0], [0], [1], [0, 0, 1, 1], [], []>} : vector<8x256xf32>, vector<256x128xf32>, vector<8x128xf32> -> vector<8x128xf32>
    %c0_3 = arith.constant 0 : index
    %c0_4 = arith.constant 0 : index
    %3 = vector.load %arg4[%c0_3, %c0_4] : memref<256x32xf32, #tpu.memory_space<vmem>>, vector<256x32xf32>
    %cst_5 = arith.constant dense<0.000000e+00> : vector<8x32xf32>
    %4 = tpu.matmul %0, %3, %cst_5 {dimension_numbers = #tpu.dot_dimension_numbers<[1], [0], [0], [1], [0, 0, 1, 1], [], []>} : vector<8x256xf32>, vector<256x32xf32>, vector<8x32xf32> -> vector<8x32xf32>
    %c0_6 = arith.constant 0 : index
    %c0_7 = arith.constant 0 : index
    %5 = vector.load %arg5[%c0_6, %c0_7] : memref<1x32xf32, #tpu.memory_space<vmem>>, vector<1x32xf32>
    %6 = vector.broadcast %5 : vector<1x32xf32> to vector<8x32xf32>
    %7 = arith.addf %4, %6 : vector<8x32xf32>
    %cst_8 = arith.constant 0.000000e+00 : f32
    %8 = vector.broadcast %cst_8 : f32 to vector<8x32xf32>
    %9 = arith.maximumf %7, %8 : vector<8x32xf32>
    %c0_9 = arith.constant 0 : index
    %c0_10 = arith.constant 0 : index
    %10 = vector.load %arg6[%c0_9, %c0_10] : memref<32x128xf32, #tpu.memory_space<vmem>>, vector<32x128xf32>
    %cst_11 = arith.constant dense<0.000000e+00> : vector<8x128xf32>
    %11 = tpu.matmul %9, %10, %cst_11 {dimension_numbers = #tpu.dot_dimension_numbers<[1], [0], [0], [1], [0, 0, 1, 1], [], []>} : vector<8x32xf32>, vector<32x128xf32>, vector<8x128xf32> -> vector<8x128xf32>
    %c0_12 = arith.constant 0 : index
    %c0_13 = arith.constant 0 : index
    %12 = vector.load %arg7[%c0_12, %c0_13] : memref<1x128xf32, #tpu.memory_space<vmem>>, vector<1x128xf32>
    %13 = vector.broadcast %12 : vector<1x128xf32> to vector<8x128xf32>
    %14 = arith.addf %11, %13 : vector<8x128xf32>
    %15 = arith.negf %14 : vector<8x128xf32>
    %16 = math.exp %15 : vector<8x128xf32>
    %cst_14 = arith.constant 1.000000e+00 : f32
    %17 = vector.broadcast %cst_14 : f32 to vector<8x128xf32>
    %18 = arith.addf %17, %16 : vector<8x128xf32>
    %19 = arith.divf %17, %18 : vector<8x128xf32>
    %c0_15 = arith.constant 0 : index
    %c0_16 = arith.constant 0 : index
    %20 = vector.load %arg2[%c0_15, %c0_16] : memref<8x128xf32, #tpu.memory_space<vmem>>, vector<8x128xf32>
    %21 = arith.mulf %2, %19 : vector<8x128xf32>
    %22 = arith.addf %20, %21 : vector<8x128xf32>
    %c0_17 = arith.constant 0 : index
    %c0_18 = arith.constant 0 : index
    %23 = vector.load %arg8[%c0_17, %c0_18] : memref<8x128xf32, #tpu.memory_space<vmem>>, vector<8x128xf32>
    tpu.vector_store %arg8[%c0_17, %c0_18], %22 {strides = array<i32>} : memref<8x128xf32, #tpu.memory_space<vmem>>, vector<8x128xf32>,
    return
  }
  func.func @transform_0(%arg0: i32) -> (i32, i32) {
    %c0_i32 = arith.constant 0 : i32
    %c0_i32_0 = arith.constant 0 : i32
    return %arg0, %c0_i32 : i32, i32
  }
  func.func @transform_1(%arg0: i32) -> (i32, i32) {
    %c0_i32 = arith.constant 0 : i32
    %c0_i32_0 = arith.constant 0 : i32
    return %arg0, %c0_i32 : i32, i32
  }
  func.func @transform_2(%arg0: i32) -> (i32, i32) {
    %c0_i32 = arith.constant 0 : i32
    %c0_i32_0 = arith.constant 0 : i32
    %c0_i32_1 = arith.constant 0 : i32
    return %c0_i32, %c0_i32_0 : i32, i32
  }
  func.func @transform_3(%arg0: i32) -> (i32, i32) {
    %c0_i32 = arith.constant 0 : i32
    %c0_i32_0 = arith.constant 0 : i32
    %c0_i32_1 = arith.constant 0 : i32
    return %c0_i32, %c0_i32_0 : i32, i32
  }
  func.func @transform_4(%arg0: i32) -> (i32, i32) {
    %c0_i32 = arith.constant 0 : i32
    %c0_i32_0 = arith.constant 0 : i32
    %c0_i32_1 = arith.constant 0 : i32
    return %c0_i32, %c0_i32_0 : i32, i32
  }
  func.func @transform_5(%arg0: i32) -> (i32, i32) {
    %c0_i32 = arith.constant 0 : i32
    %c0_i32_0 = arith.constant 0 : i32
    %c0_i32_1 = arith.constant 0 : i32
    return %c0_i32, %c0_i32_0 : i32, i32
  }
  func.func @transform_6(%arg0: i32) -> (i32, i32) {
    %c0_i32 = arith.constant 0 : i32
    %c0_i32_0 = arith.constant 0 : i32
    %c0_i32_1 = arith.constant 0 : i32
    return %c0_i32, %c0_i32_0 : i32, i32
  }
  func.func @transform_7(%arg0: i32) -> (i32, i32) {
    %c0_i32 = arith.constant 0 : i32
    %c0_i32_0 = arith.constant 0 : i32
    return %arg0, %c0_i32 : i32, i32
  }
}

</mosaic_0001>

<bundles_post_ra>
// kernel: tpu_custom_call.1
= control target key start
LH: loop header
LB: loop body
LE: loop exit
PB: predicated region body
PF: predicated region fallthrough
CT: control target
= control target key end

     0   :  { %s817_s0 = inlined_call_operand.vmem [shape: f32[8,256], index: 0, kind: input, shape index: {}]   ;;  %s818_s1 = inlined_call_operand.vmem [shape: f32[8,128], index: 1, kind: input, shape index: {}]   ;;  %s819_s2 = inlined_call_operand.vmem [shape: f32[256,128], index: 2, kind: input, shape index: {}]   ;;  %s820_s3 = inlined_call_operand.vmem [shape: f32[256,32], index: 3, kind: input, shape index: {}]   ;;  %s821_s4 = inlined_call_operand.vmem [shape: f32[1,32], index: 4, kind: input, shape index: {}]   ;;  %s822_s5 = inlined_call_operand.vmem [shape: f32[32,128], index: 5, kind: input, shape index: {}]   ;;  %s823_s6 = inlined_call_operand.vmem [shape: f32[1,128], index: 6, kind: input, shape index: {}]   ;;  %s824_s7 = inlined_call_operand.hbm [shape: f32[8,128], index: 7, kind: output, shape index: {}]  }
   0x1   :  { %v147_v0 = vld [vmem:[%s820_s3 + $0x80] sm:$0xff]  ;;  %v148_v1 = vld [vmem:[%s820_s3 + $0x88] sm:$0xff]  ;;  %v149_v5 = vld [vmem:[%s820_s3 + $0x90] sm:$0xff] }
   0x2   :  { %v131_v2 = vld [vmem:[%s820_s3] sm:$0xff]  ;;  %v472_v3 = vpack.c.bf16 %v148_v1, %v147_v0  ;;  %v132_v4 = vld [vmem:[%s820_s3 + $0x8] sm:$0xff]  ;;  %v150_v6 = vld [vmem:[%s820_s3 + $0x98] sm:$0xff] }
   0x3   :  { %v474_v7 = vpack.c.bf16 %v132_v4, %v131_v2  ;;  %v476_v8 = vpack.c.bf16 %v150_v6, %v149_v5  ;;  %v133_v9 = vld [vmem:[%s820_s3 + $0x10] sm:$0xff]  ;;  %v134_v10 = vld [vmem:[%s820_s3 + $0x18] sm:$0xff]  ;;  %v151_v11 = vld [vmem:[%s820_s3 + $0xa0] sm:$0xff] }
   0x4   :  { %473 = vmatprep.subr.bf16.mxu1 %v472_v3  ;;  %v152_v12 = vld [vmem:[%s820_s3 + $0xa8] sm:$0xff]  ;;  %v478_v13 = vpack.c.bf16 %v134_v10, %v133_v9  ;;  %v135_v15 = vld [vmem:[%s820_s3 + $0x20] sm:$0xff]  ;;  %v153_v17 = vld [vmem:[%s820_s3 + $0xb0] sm:$0xff] }
   0x5   :  { %475 = vmatpush3.bf16.msra.mxu1 %v474_v7  ;;  %v480_v14 = vpack.c.bf16 %v152_v12, %v151_v11  ;;  %v136_v16 = vld [vmem:[%s820_s3 + $0x28] sm:$0xff]  ;;  %v154_v18 = vld [vmem:[%s820_s3 + $0xb8] sm:$0xff]  ;;  %v137_v21 = vld [vmem:[%s820_s3 + $0x30] sm:$0xff] }
   0x6   :  { %477 = vmatprep.subr.bf16.mxu1 %v476_v8  ;;  %v482_v19 = vpack.c.bf16 %v136_v16, %v135_v15  ;;  %v484_v20 = vpack.c.bf16 %v154_v18, %v153_v17  ;;  %v138_v22 = vld [vmem:[%s820_s3 + $0x38] sm:$0xff]  ;;  %v155_v23 = vld [vmem:[%s820_s3 + $0xc0] sm:$0xff]  ;;  %v156_v24 = vld [vmem:[%s820_s3 + $0xc8] sm:$0xff] }
   0x7   :  { %v28_v25 = vld [vmem:[%s817_s0 + $0x8] sm:$0xff]  ;;  %v139_v26 = vld [vmem:[%s820_s3 + $0x40] sm:$0xff]  ;;  %v486_v30 = vpack.c.bf16 %v138_v22, %v137_v21  ;;  %v157_v31 = vld [vmem:[%s820_s3 + $0xd0] sm:$0xff]  ;;  %v488_v36 = vpack.c.bf16 %v156_v24, %v155_v23 }
   0x8   :  { %v140_v27 = vld [vmem:[%s820_s3 + $0x48] sm:$0xff]  ;;  %234 = vmatprep.mubr.f32.mxu1 %v28_v25  ;;  %v45_v28 = vld [vmem:[%s819_s2 + $0x80] sm:$0xff]  ;;  %125 = vmatprep.mubr.f32.mxu0 %v28_v25  ;;  %v47_v35 = vld [vmem:[%s819_s2 + $0x90] sm:$0xff] }
   0x9   :  { %479 = vmatpush3.bf16.msra.mxu1 %v478_v13  ;;  %v46_v29 = vld [vmem:[%s819_s2 + $0x88] sm:$0xff]  ;;  %v29_v33 = vld [vmem:[%s819_s2] sm:$0xff]  ;;  %v48_v38 = vld [vmem:[%s819_s2 + $0x98] sm:$0xff]  ;;  %v490_v46 = vpack.c.bf16 %v140_v27, %v139_v26 }
   0xa   :  { %481 = vmatprep.subr.bf16.mxu1 %v480_v14  ;;  %v440_v32 = vpack.c.bf16 %v46_v29, %v45_v28  ;;  %v30_v34 = vld [vmem:[%s819_s2 + $0x8] sm:$0xff]  ;;  %v31_v39 = vld [vmem:[%s819_s2 + $0x10] sm:$0xff]  ;;  %v32_v40 = vld [vmem:[%s819_s2 + $0x18] sm:$0xff]  ;;  %v444_v42 = vpack.c.bf16 %v48_v38, %v47_v35 }
   0xb   :  { %v442_v37 = vpack.c.bf16 %v30_v34, %v29_v33  ;;  %v158_v41 = vld [vmem:[%s820_s3 + $0xd8] sm:$0xff]  ;;  %v49_v43 = vld [vmem:[%s819_s2 + $0xa0] sm:$0xff]  ;;  %v50_v44 = vld [vmem:[%s819_s2 + $0xa8] sm:$0xff]  ;;  %v446_v45 = vpack.c.bf16 %v32_v40, %v31_v39 }
   0xc   :  { %441 = vmatprep.subr.bf16.mxu0 %v440_v32  ;;  %v141_v47 = vld [vmem:[%s820_s3 + $0x50] sm:$0xff]  ;;  %v448_v48 = vpack.c.bf16 %v50_v44, %v49_v43  ;;  %v33_v49 = vld [vmem:[%s819_s2 + $0x20] sm:$0xff]  ;;  %v34_v50 = vld [vmem:[%s819_s2 + $0x28] sm:$0xff]  ;;  %v492_v51 = vpack.c.bf16 %v158_v41, %v157_v31 }
   0xd   :  { %483 = vmatpush3.bf16.msra.mxu1 %v482_v19  ;;  %443 = vmatpush3.bf16.msra.mxu0 %v442_v37  ;;  %v142_v52 = vld [vmem:[%s820_s3 + $0x58] sm:$0xff]  ;;  %v51_v53 = vld [vmem:[%s819_s2 + $0xb0] sm:$0xff]  ;;  %v159_v55 = vld [vmem:[%s820_s3 + $0xe0] sm:$0xff]  ;;  %v450_v57 = vpack.c.bf16 %v34_v50, %v33_v49 }
   0xe   :  { %485 = vmatprep.subr.bf16.mxu1 %v484_v20  ;;  %445 = vmatprep.subr.bf16.mxu0 %v444_v42  ;;  %v52_v54 = vld [vmem:[%s819_s2 + $0xb8] sm:$0xff]  ;;  %v160_v56 = vld [vmem:[%s820_s3 + $0xe8] sm:$0xff]  ;;  %v494_v58 = vpack.c.bf16 %v142_v52, %v141_v47  ;;  %v143_v59 = vld [vmem:[%s820_s3 + $0x60] sm:$0xff] }
   0xf   :  { %v452_v60 = vpack.c.bf16 %v52_v54, %v51_v53  ;;  %v35_v61 = vld [vmem:[%s819_s2 + $0x30] sm:$0xff]  ;;  %v36_v62 = vld [vmem:[%s819_s2 + $0x38] sm:$0xff]  ;;  %v496_v63 = vpack.c.bf16 %v160_v56, %v159_v55  ;;  %v144_v0 = vld [vmem:[%s820_s3 + $0x68] sm:$0xff] }
  0x10   :  { %v53_v1 = vld [vmem:[%s819_s2 + $0xc0] sm:$0xff]  ;;  %v54_v2 = vld [vmem:[%s819_s2 + $0xc8] sm:$0xff]  ;;  %v161_v3 = vld [vmem:[%s820_s3 + $0xf0] sm:$0xff] }
  0x11   :  { %487 = vmatpush3.bf16.msra.mxu1 %v486_v30  ;;  %447 = vmatpush3.bf16.msra.mxu0 %v446_v45  ;;  %v162_v4 = vld [vmem:[%s820_s3 + $0xf8] sm:$0xff] }
  0x12   :  { %489 = vmatprep.subr.bf16.mxu1 %v488_v36  ;;  %449 = vmatprep.subr.bf16.mxu0 %v448_v48 }
  0x15   :  { %491 = vmatpush3.bf16.msra.mxu1 %v490_v46 }
  0x16   :  { %493 = vmatprep.subr.bf16.mxu1 %v492_v51 }
  0x17   :  { %12 = vsyncpa [#allocation3], 0  ;;  %451 = vmatpush3.bf16.msra.mxu0 %v450_v57  ;;  %v454_v5 = vpack.c.bf16 %v36_v62, %v35_v61  ;;  %v498_v6 = vpack.c.bf16 %v144_v0, %v143_v59  ;;  %v145_v7 = vld [vmem:[%s820_s3 + $0x70] sm:$0xff]  ;;  %v456_v8 = vpack.c.bf16 %v54_v2, %v53_v1  ;;  %v37_v9 = vld [vmem:[%s819_s2 + $0x40] sm:$0xff]  ;;  %v500_v11 = vpack.c.bf16 %v162_v4, %v161_v3  ;;  %s545_s26 = smov [#allocation2]  }
  0x18   :  { %453 = vmatprep.subr.bf16.mxu0 %v452_v60  ;;  %v38_v10 = vld [vmem:[%s819_s2 + $0x48] sm:$0xff]  ;;  %v146_v12 = vld [vmem:[%s820_s3 + $0x78] sm:$0xff]  ;;  %v55_v13 = vld [vmem:[%s819_s2 + $0xd0] sm:$0xff]  ;;  %v542_v37 = vmov 0.0|0.0   ;;  %vm543_vm0 = vmmov 0   ;;  %v544_v41 = vmov 0.0  }
  0x19   :  { %495 = vmatpush3.bf16.msra.mxu1 %v494_v58  ;;  %v56_v14 = vld [vmem:[%s819_s2 + $0xd8] sm:$0xff]  ;;  %v458_v15 = vpack.c.bf16 %v38_v10, %v37_v9  ;;  %v502_v16 = vpack.c.bf16 %v146_v12, %v145_v7  ;;  %v39_v18 = vld [vmem:[%s819_s2 + $0x50] sm:$0xff]  ;;  %v57_v20 = vld [vmem:[%s819_s2 + $0xe0] sm:$0xff]  ;;  %vm252_vm1 = vcmask 261120   ;;  %s342_s27 = sshll.u32 %s545_s26, 4  ;;  %s343_s27 = int_to_ptr.vmem [resolvable:$true] %s342_s27 }
  0x1a   :  { %497 = vmatprep.subr.bf16.mxu1 %v496_v63  ;;  %v460_v17 = vpack.c.bf16 %v56_v14, %v55_v13  ;;  %v40_v19 = vld [vmem:[%s819_s2 + $0x58] sm:$0xff]  ;;  %v58_v21 = vld [vmem:[%s819_s2 + $0xe8] sm:$0xff]  ;;  %v27_v23 = vld [vmem:[%s817_s0] sm:$0xff]  ;;  %p523_p1 = scmp.lt.s32.totalorder %s343_s27, %s343_s27 }
  0x1b   :  { %455 = vmatpush3.bf16.msra.mxu0 %v454_v5  ;;  %v462_v22 = vpack.c.bf16 %v40_v19, %v39_v18  ;;  %v464_v24 = vpack.c.bf16 %v58_v21, %v57_v20  ;;  %v41_v25 = vld [vmem:[%s819_s2 + $0x60] sm:$0xff]  ;;  %v42_v26 = vld [vmem:[%s819_s2 + $0x68] sm:$0xff]  ;;  %v59_v27 = vld [vmem:[%s819_s2 + $0xf0] sm:$0xff] }
  0x1c   :  { %457 = vmatprep.subr.bf16.mxu0 %v456_v8  ;;  %v60_v28 = vld [vmem:[%s819_s2 + $0xf8] sm:$0xff]  ;;  %v466_v29 = vpack.c.bf16 %v42_v26, %v41_v25  ;;  %v43_v31 = vld [vmem:[%s819_s2 + $0x70] sm:$0xff]  ;;  %v241_v34 = vld [vmem:[%s822_s5] sm:$0xff] }
  0x1d   :  { %499 = vmatpush3.bf16.msra.mxu1 %v498_v6  ;;  %v468_v30 = vpack.c.bf16 %v60_v28, %v59_v27  ;;  %v44_v32 = vld [vmem:[%s819_s2 + $0x78] sm:$0xff]  ;;  %v242_v35 = vld [vmem:[%s822_s5 + $0x8] sm:$0xff]  ;;  %v243_v38 = vld [vmem:[%s822_s5 + $0x10] sm:$0xff] }
  0x1e   :  { %501 = vmatprep.subr.bf16.mxu1 %v500_v11  ;;  %v470_v33 = vpack.c.bf16 %v44_v32, %v43_v31  ;;  %v505_v36 = vpack.c.bf16 %v242_v35, %v241_v34  ;;  %v244_v39 = vld [vmem:[%s822_s5 + $0x18] sm:$0xff]  ;;  %v350_v43 = vld [vmem:[%s821_s4] ss:$0 sm:$0xff] }
  0x1f   :  { %459 = vmatpush3.bf16.msra.mxu0 %v458_v15  ;;  %v508_v40 = vpack.c.bf16 %v244_v39, %v243_v38  ;;  %v351_v51 = vld [vmem:[%s823_s6] ss:$0 sm:$0xff]  ;;  %s518_s6 = scalar_lea.vmem %s343_s27, 128 }
  0x20   :  { %461 = vmatprep.subr.bf16.mxu0 %v460_v17  ;;  %v332_v59 = vld [vmem:[%s818_s1] sm:$0xff]  ;;  %p519_p0 = scmp.ne.s32.totalorder %s343_s27, %s518_s6  ;;  %p524_p2 = scmp.lt.s32.totalorder %s518_s6, %s518_s6 }
  0x21   :  { %503 = vmatpush3.bf16.msra.mxu1 %v502_v16 }
  0x22   :  { %p525_p3 = por %p524_p2, %p523_p1 }
  0x23   :  { %463 = vmatpush3.bf16.msra.mxu0 %v462_v22 }
  0x24   :  { %235 = vmatmul.mubr.f32.vlgmr.msra.gmra.mrb[0].mxu1 %v27_v23  ;;  %465 = vmatprep.subr.bf16.mxu0 %v464_v24  ;;  %p526_p4 = pnand %p525_p3, %p519_p0 }
  0x27   :  { %467 = vmatpush3.bf16.msra.mxu0 %v466_v29 }
  0x28   :  { %469 = vmatprep.subr.bf16.mxu0 %v468_v30 }
  0x2b   :  { %471 = vmatpush3.bf16.msra.mxu0 %v470_v33 }
  0x2c   :  { %504 = vmatprep.subr.bf16.mxu0 %v542_v37 }
  0x2e   :  { %126 = vmatmul.mubr.f32.vlgmr.msra.gmra.mrb[0].mxu0 %v27_v23 }
  0x2f   :  { %506 = vmatpush3.bf16.msra.mxu0 %v505_v36  ;;  %437 = vmatprep.mubr.msk.f32.mxu0 %vm543_vm0, %v544_v41 }
  0x30   :  { %507 = vmatprep.subr.bf16.mxu0 %v542_v37 }
  0x33   :  { %509 = vmatpush3.bf16.msra.mxu0 %v508_v40 }
  0xf7   :  { %v421_v42 = vpop.f32.mrb[0].mxu1 }
  0xf8   :  { %v422_v44 = vpop.f32.mrb[1].mxu1 }
  0xf9   :  { %v423_v45 = vadd.f32 %v422_v44, %v421_v42 }
  0xfb   :  { %v237_v46 = vadd.f32 %v423_v45, %v350_v43 }
  0xfd   :  { %v240_v47 = vmax.f32 %v237_v46, 0.0 }
  0xff   :  { %438 = vmatmul.mubr.msk.f32.vlgmr.msra.gmra.mrb[2].mxu0 %vm252_vm1, %v240_v47 }
 0x101   :  { %v386_v48 = vpop.f32.mrb[0].mxu0 }
 0x102   :  { %v387_v49 = vpop.f32.mrb[1].mxu0 }
 0x103   :  { %v388_v50 = vadd.f32 %v387_v49, %v386_v48 }
 0x1d2   :  { %v322_v52 = vpop.f32.mrb[2].mxu0 }
 0x1d3   :  { %v323_v53 = vadd.f32 %v351_v51, %v322_v52  ;;  %v439_v54 = vpop.f32.mrb[3].mxu0 }
 0x1d5   :  { %v353_v55 = vmul.f32 -1.442695, %v323_v53 }
 0x1d7   :  { %514 = vpow2.f32 %v353_v55 }
 0x1e1   :  { %v515_v56 = vpop.eup %514 }
 0x1e2   :  { %v329_v57 = vadd.f32 1.0, %v515_v56 }
 0x1e4   :  { %516 = vrcp.f32 %v329_v57 }
 0x1ee   :  { %v517_v58 = vpop.eup %516 }
 0x1ef   :  { %v333_v60 = vmul.f32 %v517_v58, %v388_v50 }
 0x1f1   :  { %v334_v61 = vadd.f32 %v333_v60, %v332_v59 }
 0x1f3   :  { %335 = vst [vmem:[#allocation2] sm:$0xff] %v334_v61 }
 0x1f4   :  { %529 = shalt.err (!%p526_p4)
}
 0x1f5   :  { %s530_s30 = scalar_lea.hbm %s824_s7, 128 }
 0x1f6   :  { %p531_p5 = scmp.ne.s32.totalorder %s824_s7, %s530_s30  ;;  %p534_p6 = scmp.lt.u32.totalorder %s530_s30, %s824_s7 }
 0x1f8   :  { %p536_p7 = pnand %p534_p6, %p531_p5 }
 0x1fa   :  { %539 = shalt.err (!%p536_p7)
}
 0x1fb   :  { %345 = dma.vmem_to_hbm [thread:$0]  %s343_s27, 128, %s824_s7, [#allocation3]  }
 0x1fc   :  { %540 = dma.done.wait [#allocation3], 128  }
 0x1fd   :  { %541 = vsyncadd [#allocation3], 4294967168 }
 0x1fe   :  { %349 = vsyncpa [#allocation3], 1 }

</bundles_post_ra>
